<compile_context>
chip_gen: v5e
topology: v5e:2x2
jax: 0.10.0
libtpu: 0.0.40
codegen_flags: <defaults>
</compile_context>

<pallas_src>
import jax
import jax.numpy as jnp
import numpy as np
from jax.experimental import pallas as pl
from jax.experimental.pallas import tpu as pltpu

_EPS = 1e-5
_LANES = 128
_MAX_TILE_ROWS = 1024        # (1024, 128) f32 tile = 512 KiB per input buffer
_PAD_LOGIT = -1e9            # tanh(-5e8) == -1 exactly -> sigmoid(pad) == 0


def _cdiv(a, b):
    return -(-a // b)


def _round_up(x, m):
    return _cdiv(x, m) * m


def _choose_tiling(rows, n_splits):
    """Pick (tile_rows, tiles_per_split, rows_total >= rows).

    Prefers an exact factorization (rows_total == rows -> no host padding,
    no wasted DMA/compute); falls back to minimally padded balanced tiles.
    """
    if n_splits == 1 and rows <= _MAX_TILE_ROWS:
        # Single tile equal to the full row extent (allowed even if not a
        # multiple of 8, since the block equals the full array dim).
        return rows, 1, rows

    ntiles_min = max(_cdiv(rows, _MAX_TILE_ROWS), n_splits)
    for ntiles in range(ntiles_min, min(ntiles_min + 64, rows) + 1):
        if ntiles % n_splits or rows % ntiles:
            continue
        tr = rows // ntiles
        if tr % 8 == 0 and tr <= _MAX_TILE_ROWS:
            return tr, ntiles // n_splits, rows     # exact, no padding

    # Fallback: balanced tiles with the smallest possible row padding.
    tr = min(_MAX_TILE_ROWS, _round_up(_cdiv(rows, ntiles_min), 8))
    ntiles = _round_up(_cdiv(rows, tr), n_splits)
    return tr, ntiles // n_splits, ntiles * tr


def _make_dice_partials_kernel(num_preds):
    """Kernel computing lane-shaped partial sums for `num_preds` predictions
    sharing one ground-truth tensor (labels are read once per tile).

    refs: pred_0..pred_{K-1}, gt, out, acc
      pred_k, gt : (1, tile_rows, 128) tiles of the (N, rows, 128) view
      out        : (1, 1, 8, 128) per-(sample, split) accumulator slab,
                   rows [tp_0, sp_0, ..., tp_{K-1}, sp_{K-1}, sg, 0...]
      acc        : (8, 128) f32 VMEM scratch (unmasked accumulation)
    """
    out_rows = 2 * num_preds + 1
    assert out_rows <= 8

    def kernel(*refs):
        pred_refs = refs[:num_preds]
        gt_ref = refs[num_preds]
        out_ref = refs[num_preds + 1]
        acc_ref = refs[num_preds + 2]

        t = pl.program_id(2)

        g = gt_ref[0].astype(jnp.float32)                   # (tile_rows, 128)

        # Per-tile partial sums over the sublane (row) axis only; the
        # cross-lane reduce is deferred to tiny JAX glue.
        parts = []
        for k in range(num_preds):
            x = pred_refs[k][0].astype(jnp.float32)         # (tile_rows, 128)
            p = 0.5 * jnp.tanh(0.5 * x) + 0.5               # sigmoid, 1 EUP op
            parts.append(jnp.sum(g * p, axis=0, keepdims=True))   # tp_k
            parts.append(jnp.sum(p, axis=0, keepdims=True))       # sp_k
        parts.append(jnp.sum(g, axis=0, keepdims=True))           # sg
        if out_rows < 8:
            parts.append(jnp.zeros((8 - out_rows, _LANES), jnp.float32))
        update = jnp.concatenate(parts, axis=0)             # (8, 128), full vreg

        @pl.when(t == 0)
        def _init():
            acc_ref[...] = update

        @pl.when(t > 0)
        def _accum():
            acc_ref[...] += update

        @pl.when(t == pl.num_programs(2) - 1)
        def _finish():
            out_ref[0, 0] = acc_ref[...]

    return kernel


def _dice_partials(preds_list, labels):
    """Fused single Pallas pass over all predictions + labels.

    Returns (N, 8) f32 sums: [tp_0, sp_0, ..., tp_{K-1}, sp_{K-1}, sg, ...].
    """
    num_preds = len(preds_list)
    n = preds_list[0].shape[0]
    m = int(np.prod(preds_list[0].shape[1:]))
    m_gt = int(np.prod(labels.shape[1:]))
    if m != m_gt:
        raise ValueError(
            f"pred/label flattened sizes differ ({m} vs {m_gt}); "
            "DiceLoss(sigmoid) expects matching element counts.")
    for p in preds_list[1:]:
        if p.shape != preds_list[0].shape:
            raise ValueError("all predictions must share one shape")

    rows = _cdiv(m, _LANES)

    # Default tiling; opportunistically split the reduction axis two ways for
    # single-sample calls (keeps both v7x TensorCores busy) when it is free.
    n_splits = 1
    tile_rows, tiles_per_split, rows_total = _choose_tiling(rows, 1)
    if n == 1 and rows >= 16:
        alt = _choose_tiling(rows, 2)
        if alt[2] == rows_total:              # no extra padding cost
            n_splits = 2
            tile_rows, tiles_per_split, rows_total = alt

    m_total = rows_total * _LANES

    def _prep(x, pad_value):
        x2 = x.reshape(n, -1)
        if m_total != x2.shape[1]:
            # Conditional pad: only materialized for ragged shapes.  Pad
            # logits with a huge negative value so sigmoid(pad) == 0 exactly;
            # labels pad with 0 -> padded elements contribute nothing.
            x2 = jnp.pad(x2, ((0, 0), (0, m_total - x2.shape[1])),
                         constant_values=pad_value)
        # Lane/sublane-dense: the long pixel axis fills both sublanes & lanes.
        return x2.reshape(n, rows_total, _LANES)

    ins = [_prep(p, _PAD_LOGIT) for p in preds_list] + [_prep(labels, 0)]

    tile_spec = pl.BlockSpec(
        (1, tile_rows, _LANES),
        lambda b, s, t: (b, s * tiles_per_split + t, 0))
    out_spec = pl.BlockSpec((1, 1, 8, _LANES), lambda b, s, t: (b, s, 0, 0))

    elems = n * m_total
    bytes_accessed = sum(int(np.prod(x.shape)) * x.dtype.itemsize for x in ins)
    bytes_accessed += n * n_splits * 8 * _LANES * 4
    cost = pl.CostEstimate(
        flops=int(elems * (5 * num_preds + 1)),
        transcendentals=int(elems * num_preds),
        bytes_accessed=int(bytes_accessed),
    )

    partials = pl.pallas_call(
        _make_dice_partials_kernel(num_preds),
        out_shape=jax.ShapeDtypeStruct((n, n_splits, 8, _LANES), jnp.float32),
        grid_spec=pltpu.PrefetchScalarGridSpec(
            num_scalar_prefetch=0,
            grid=(n, n_splits, tiles_per_split),
            in_specs=[tile_spec] * (num_preds + 1),
            out_specs=out_spec,
            scratch_shapes=[pltpu.VMEM((8, _LANES), jnp.float32)],
        ),
        compiler_params=pltpu.CompilerParams(
            dimension_semantics=("parallel", "parallel", "arbitrary"),
            vmem_limit_bytes=32 * 1024 * 1024,
        ),
        cost_estimate=cost,
    )(*ins)

    # Deferred split + cross-lane reduce (tiny (N, n_splits, 8, 128) array).
    return jnp.sum(partials, axis=(1, 3))                    # (N, 8)


def _dice_losses_from_sums(sums, num_preds):
    sg = sums[:, 2 * num_preds]
    losses = []
    for k in range(num_preds):
        tp = sums[:, 2 * k]
        sp = sums[:, 2 * k + 1]
        # (2 tp + eps) / (2 tp + fp + fn + eps) == (2 tp + eps) / (sp + sg + eps)
        dice = (2.0 * tp + _EPS) / (sp + sg + _EPS)
        losses.append(1.0 - jnp.mean(dice))
    return losses


class LossWrapper:
    """JAX/Pallas port of nets/losses.py::LossWrapper with name='DiceLoss'."""

    def __init__(self, name="DiceLoss"):
        if name != "DiceLoss":
            raise NotImplementedError(
                "Only name='DiceLoss' is implemented in Pallas.")
        self.name = name

    def __call__(self, preds, labels):
        # mirrors: h, w = labels.size(1), labels.size(2)
        _h, _w = labels.shape[1], labels.shape[2]
        if isinstance(preds, (list, tuple)):
            # Fused: one kernel pass reads labels from HBM once for both preds.
            sums = _dice_partials([preds[0], preds[1]], labels)
            loss0, loss1 = _dice_losses_from_sums(sums, 2)
            return loss0 * 0.8 + loss1 * 0.2
        sums = _dice_partials([preds], labels)
        (loss,) = _dice_losses_from_sums(sums, 1)
        return loss

    forward = __call__


def _reference_dice_loss(pred, label, eps=1e-5):
    """Pure-JAX reference for 1 - diceCoeffv2(..., activation='sigmoid')."""
    n = label.shape[0]
    p = jax.nn.sigmoid(pred.reshape(n, -1).astype(jnp.float32))
    g = label.reshape(n, -1).astype(jnp.float32)
    tp = jnp.sum(g * p, axis=1)
    fp = jnp.sum(p, axis=1) - tp
    fn = jnp.sum(g, axis=1) - tp
    dice = (2.0 * tp + eps) / (2.0 * tp + fp + fn + eps)
    return 1.0 - jnp.sum(dice) / n


if __name__ == "__main__":
    key = jax.random.PRNGKey(0)
    k1, k2, k3, k4, k5 = jax.random.split(key, 5)

    loss_fn = LossWrapper("DiceLoss")

    # --- single-prediction path (aligned shapes -> no host padding) ---
    N, C, H, W = 2, 1, 16, 16
    preds = jax.random.normal(k1, (N, C, H, W), dtype=jnp.float32)
    preds_b = jax.random.normal(k2, (N, C, H, W), dtype=jnp.float32)
    labels = (jax.random.uniform(k3, (N, H, W)) > 0.5).astype(jnp.float32)

    loss = jax.block_until_ready(loss_fn(preds, labels))
    ref = _reference_dice_loss(preds, labels)
    np.testing.assert_allclose(np.array(loss), np.array(ref),
                               rtol=1e-5, atol=1e-5)

    # --- list-of-predictions path (0.8 / 0.2), fused into one kernel pass ---
    loss_list = jax.block_until_ready(loss_fn([preds, preds_b], labels))
    ref_list = (0.8 * _reference_dice_loss(preds, labels)
                + 0.2 * _reference_dice_loss(preds_b, labels))
    np.testing.assert_allclose(np.array(loss_list), np.array(ref_list),
                               rtol=1e-5, atol=1e-5)

    # --- single-sample path (exercises the two-way reduction split) ---
    preds1 = jax.random.normal(k4, (1, 1, 64, 64), dtype=jnp.float32)
    labels1 = (jax.random.uniform(k5, (1, 64, 64)) > 0.5).astype(jnp.float32)
    loss1 = jax.block_until_ready(loss_fn(preds1, labels1))
    ref1 = _reference_dice_loss(preds1, labels1)
    np.testing.assert_allclose(np.array(loss1), np.array(ref1),
                               rtol=1e-5, atol=1e-5)

    # --- ragged spatial size (exercises the conditional padding path) ---
    kr1, kr2 = jax.random.split(k4)
    preds_r = jax.random.normal(kr1, (2, 1, 10, 10), dtype=jnp.float32)
    labels_r = (jax.random.uniform(kr2, (2, 10, 10)) > 0.5).astype(jnp.float32)
    loss_r = jax.block_until_ready(loss_fn(preds_r, labels_r))
    ref_r = _reference_dice_loss(preds_r, labels_r)
    np.testing.assert_allclose(np.array(loss_r), np.array(ref_r),
                               rtol=1e-5, atol=1e-5)

    print("KERNEL_OK")
</pallas_src>

<mosaic_0001>
module attributes {stable_mosaic.version = 11 : i64} {
  func.func @kernel(%arg0: i32, %arg1: i32, %arg2: i32, %arg3: memref<1x2x128xf32, #tpu.memory_space<vmem>>, %arg4: memref<1x2x128xf32, #tpu.memory_space<vmem>>, %arg5: memref<1x1x8x128xf32, #tpu.memory_space<vmem>>, %arg6: memref<8x128xf32, #tpu.memory_space<vmem>>) attributes {dimension_semantics = [#tpu.dimension_semantics<parallel>, #tpu.dimension_semantics<parallel>, #tpu.dimension_semantics<arbitrary>], iteration_bounds = array<i64: 2, 1, 1>, scalar_prefetch = 0 : i64, scratch_operands = 1 : i64, tpu.core_type = #tpu.core_type<tc>, window_params = [{transform_indices = @transform_0, window_bounds = array<i64: 1, 2, 128>}, {transform_indices = @transform_1, window_bounds = array<i64: 1, 2, 128>}, {transform_indices = @transform_2, window_bounds = array<i64: 1, 1, 8, 128>}]} {
    %c0 = arith.constant 0 : index
    %c0_0 = arith.constant 0 : index
    %c0_1 = arith.constant 0 : index
    %0 = vector.load %arg4[%c0, %c0_0, %c0_1] : memref<1x2x128xf32, #tpu.memory_space<vmem>>, vector<1x2x128xf32>
    %1 = vector.shape_cast %0 : vector<1x2x128xf32> to vector<2x128xf32>
    %c0_2 = arith.constant 0 : index
    %c0_3 = arith.constant 0 : index
    %c0_4 = arith.constant 0 : index
    %2 = vector.load %arg3[%c0_2, %c0_3, %c0_4] : memref<1x2x128xf32, #tpu.memory_space<vmem>>, vector<1x2x128xf32>
    %3 = vector.shape_cast %2 : vector<1x2x128xf32> to vector<2x128xf32>
    %cst = arith.constant 5.000000e-01 : f32
    %4 = vector.broadcast %cst : f32 to vector<2x128xf32>
    %5 = arith.mulf %4, %3 : vector<2x128xf32>
    %6 = math.tanh %5 : vector<2x128xf32>
    %cst_5 = arith.constant 5.000000e-01 : f32
    %7 = vector.broadcast %cst_5 : f32 to vector<2x128xf32>
    %8 = arith.mulf %7, %6 : vector<2x128xf32>
    %cst_6 = arith.constant 5.000000e-01 : f32
    %9 = vector.broadcast %cst_6 : f32 to vector<2x128xf32>
    %10 = arith.addf %8, %9 : vector<2x128xf32>
    %11 = arith.mulf %1, %10 : vector<2x128xf32>
    %cst_7 = arith.constant dense<0.000000e+00> : vector<128xf32>
    %12 = vector.multi_reduction <add>, %11, %cst_7 [0] : vector<2x128xf32> to vector<128xf32>
    %13 = vector.shape_cast %12 : vector<128xf32> to vector<1x128xf32>
    %cst_8 = arith.constant dense<0.000000e+00> : vector<128xf32>
    %14 = vector.multi_reduction <add>, %10, %cst_8 [0] : vector<2x128xf32> to vector<128xf32>
    %15 = vector.shape_cast %14 : vector<128xf32> to vector<1x128xf32>
    %cst_9 = arith.constant dense<0.000000e+00> : vector<128xf32>
    %16 = vector.multi_reduction <add>, %1, %cst_9 [0] : vector<2x128xf32> to vector<128xf32>
    %17 = vector.shape_cast %16 : vector<128xf32> to vector<1x128xf32>
    %cst_10 = arith.constant 0.000000e+00 : f32
    %18 = vector.broadcast %cst_10 : f32 to vector<5x128xf32>
    %19 = tpu.concatenate %13, %15, %17, %18 in 0 : vector<1x128xf32>, vector<1x128xf32>, vector<1x128xf32>, vector<5x128xf32> -> vector<8x128xf32>
    %c0_i32 = arith.constant 0 : i32
    %20 = arith.cmpi eq, %arg2, %c0_i32 : i32
    %21 = arith.extui %20 : i1 to i32
    %c0_i32_11 = arith.constant 0 : i32
    %22 = arith.cmpi ne, %21, %c0_i32_11 : i32
    scf.if %22 {
      %c0_16 = arith.constant 0 : index
      %c0_17 = arith.constant 0 : index
      %29 = vector.load %arg6[%c0_16, %c0_17] : memref<8x128xf32, #tpu.memory_space<vmem>>, vector<8x128xf32>
      tpu.vector_store %arg6[%c0_16, %c0_17], %19 {strides = array<i32>} : memref<8x128xf32, #tpu.memory_space<vmem>>, vector<8x128xf32>,
    } else {
    }
    %c0_i32_12 = arith.constant 0 : i32
    %23 = arith.cmpi sgt, %arg2, %c0_i32_12 : i32
    %24 = arith.extui %23 : i1 to i32
    %c0_i32_13 = arith.constant 0 : i32
    %25 = arith.cmpi ne, %24, %c0_i32_13 : i32
    scf.if %25 {
      %c0_16 = arith.constant 0 : index
      %c0_17 = arith.constant 0 : index
      %29 = vector.load %arg6[%c0_16, %c0_17] : memref<8x128xf32, #tpu.memory_space<vmem>>, vector<8x128xf32>
      %30 = arith.addf %29, %19 : vector<8x128xf32>
      %c0_18 = arith.constant 0 : index
      %c0_19 = arith.constant 0 : index
      %31 = vector.load %arg6[%c0_18, %c0_19] : memref<8x128xf32, #tpu.memory_space<vmem>>, vector<8x128xf32>
      tpu.vector_store %arg6[%c0_18, %c0_19], %30 {strides = array<i32>} : memref<8x128xf32, #tpu.memory_space<vmem>>, vector<8x128xf32>,
    } else {
    }
    %c0_i32_14 = arith.constant 0 : i32
    %26 = arith.cmpi eq, %arg2, %c0_i32_14 : i32
    %27 = arith.extui %26 : i1 to i32
    %c0_i32_15 = arith.constant 0 : i32
    %28 = arith.cmpi ne, %27, %c0_i32_15 : i32
    scf.if %28 {
      %c0_16 = arith.constant 0 : index
      %c0_17 = arith.constant 0 : index
      %29 = vector.load %arg6[%c0_16, %c0_17] : memref<8x128xf32, #tpu.memory_space<vmem>>, vector<8x128xf32>
      %c0_18 = arith.constant 0 : index
      %c0_19 = arith.constant 0 : index
      %c0_20 = arith.constant 0 : index
      %c0_21 = arith.constant 0 : index
      %30 = vector.load %arg5[%c0_18, %c0_19, %c0_20, %c0_21] : memref<1x1x8x128xf32, #tpu.memory_space<vmem>>, vector<1x1x8x128xf32>
      %31 = vector.shape_cast %30 : vector<1x1x8x128xf32> to vector<8x128xf32>
      %32 = vector.shape_cast %29 : vector<8x128xf32> to vector<1x1x8x128xf32>
      tpu.vector_store %arg5[%c0_18, %c0_19, %c0_20, %c0_21], %32 {strides = array<i32>} : memref<1x1x8x128xf32, #tpu.memory_space<vmem>>, vector<1x1x8x128xf32>,
    } else {
    }
    return
  }
  func.func @transform_0(%arg0: i32, %arg1: i32, %arg2: i32) -> (i32, i32, i32) {
    %c1_i32 = arith.constant 1 : i32
    %0 = arith.muli %arg1, %c1_i32 : i32
    %1 = arith.addi %0, %arg2 : i32
    %c0_i32 = arith.constant 0 : i32
    %c0_i32_0 = arith.constant 0 : i32
    return %arg0, %1, %c0_i32 : i32, i32, i32
  }
  func.func @transform_1(%arg0: i32, %arg1: i32, %arg2: i32) -> (i32, i32, i32) {
    %c1_i32 = arith.constant 1 : i32
    %0 = arith.muli %arg1, %c1_i32 : i32
    %1 = arith.addi %0, %arg2 : i32
    %c0_i32 = arith.constant 0 : i32
    %c0_i32_0 = arith.constant 0 : i32
    return %arg0, %1, %c0_i32 : i32, i32, i32
  }
  func.func @transform_2(%arg0: i32, %arg1: i32, %arg2: i32) -> (i32, i32, i32, i32) {
    %c0_i32 = arith.constant 0 : i32
    %c0_i32_0 = arith.constant 0 : i32
    %c0_i32_1 = arith.constant 0 : i32
    return %arg0, %arg1, %c0_i32, %c0_i32_0 : i32, i32, i32, i32
  }
}

</mosaic_0001>

<bundles_post_ra>
// kernel: tpu_custom_call.1
= control target key start
LH: loop header
LB: loop body
LE: loop exit
PB: predicated region body
PF: predicated region fallthrough
CT: control target
= control target key end

     0   :  { %7 = vsyncpa [#allocation4], 0  ;;  %s793_s0 = inlined_call_operand.hbm [shape: f32[2,2,128], index: 0, kind: input, shape index: {}]   ;;  %s794_s1 = inlined_call_operand.hbm [shape: f32[2,2,128], index: 1, kind: input, shape index: {}]   ;;  %s795_s2 = inlined_call_operand.hbm [shape: f32[2,1,8,128], index: 2, kind: output, shape index: {}]  }
   0x1   :  { %9 = vsyncpa [#allocation4 + $0x1], 0 }
   0x2   :  { %10 = vsyncpa [#allocation7], 0 }
   0x3   :  { %12 = vsyncpa [#allocation7 + $0x1], 0 }
   0x4   :  { %13 = vsyncpa [#allocation5], 0 }
   0x5   :  { %15 = vsyncpa [#allocation5 + $0x1], 0  ;;  %s660_s9 = smov 0   ;;  %s662_s10 = smov 0  }
   0x6   :  { %s664_s11 = smov 0   ;;  %s666_s12 = smov 0  }
   0x7   :  { %s668_s13 = smov 0   ;;  %s670_s14 = smov 0  }
   0x8 LB: > { %s412_s15 = sadd.s32 4294967295, %s643_s14   ;;  %s413_s16 = sadd.s32 4294967294, %s643_s14   ;;  %s643_s14 = sphi %s670_s14, %s21_s14   ;;  %s639_s13 = sphi %s668_s13, %s804_s13   ;;  %s635_s12 = sphi %s666_s12, %s803_s12   ;;  %s631_s11 = sphi %s664_s11, %s802_s11   ;;  %s627_s10 = sphi %s662_s10, %s801_s10   ;;  %s623_s9 = sphi %s660_s9, %s800_s9  }
   0x9   : > { %s40_s17 = sadd.s32 1, %s639_s13  ;;  %s51_s18 = sadd.s32 1, %s631_s11 }
   0xa   : > { %p42_p0 = scmp.ge.s32.totalorder %s40_s17, 2  ;;  %p58_p1 = scmp.ne.s32.totalorder %s631_s11, %s627_s10 }
   0xb   : > { %p59_p2 = scmp.eq.s32.totalorder %s643_s14, 0  ;;  %p64_p3 = scmp.ne.s32.totalorder %s627_s10, %s623_s9 }
   0xc   : > { %s806_s17 = smov (%p42_p0, %s40_s17), 0  ;;  %p65_p5 = scmp.eq.s32.totalorder %s412_s15, 0 }
   0xd   : > { %p701_p4 = por %p59_p2, %p58_p1  ;;  %s46_s20 = ssub.s32 %s639_s13, %s806_s17 }
   0xe   : > { %p120_p6 = scmp.eq.s32.totalorder %s412_s15, 1  ;;  %p49_p7 = scmp.eq.s32.totalorder %s46_s20, 0 }
   0xf   : > { %p707_p8 = por %p65_p5, %p64_p3  ;;  %p126_p10 = scmp.eq.s32.totalorder %s413_s16, 1 }
  0x10   : > { %p711_p9 = por %p120_p6, %p58_p1  ;;  %p415_p12 = scmp.ge.s32.totalorder %s643_s14, 2 }
  0x11   : > { %s716_s23 = scalar_select %p49_p7, %s631_s11, %s51_s18  }
  0x12   : > { %p718_p11 = por %p126_p10, %p64_p3  ;;  %p445_p13 = scmp.lt.s32.totalorder %s643_s14, 2 }
  0x13   : > { %s146_s25 = sand.u32 1, %s631_s11   ;;  %s417_s27 = sshll.u32 %s639_s13, 1 }
  0x14   : > { %s416_s26 = sshll.u32 %s146_s25, 1  ;;  %s156_s30 = scalar_lea.hbm %s793_s0, %s417_s27 }
  0x15   : > { %s150_s3 = scalar_lea.vmem [#allocation3], %s416_s26  ;;  %s158_s5 = sshll.u32 %s156_s30, 4  ;;  %s159_s5 = int_to_ptr.hbm [resolvable:$true] %s158_s5 }
  0x16   : > { %s160_s4 = sshll.u32 %s150_s3, 4  ;;  %p435_p0 = pnand %p445_p13, %p701_p4  ;;  %s161_s4 = int_to_ptr.vmem [resolvable:$true] %s160_s4 }
  0x17   : > { %p420_p1 = scmp.ge.s32.totalorder %s643_s14, 1  ;;  %p186_p2 = scmp.lt.s32.totalorder %s643_s14, 3 }
  0x18   : > { %s147_s6 = scalar_lea.sflag [#allocation4], %s146_s25  ;;  %s177_s15 = scalar_lea.hbm %s794_s1, %s417_s27 }
  0x19   : > { %437 = dma.hbm_to_vmem [thread:$0]  (!%p435_p0), %s159_s5, 32, %s161_s4, %s147_s6  }
  0x1a   : > { %p187_p3 = pnand %p420_p1, %p186_p2  ;;  %s171_s16 = scalar_lea.vmem [#allocation6], %s416_s26 }
  0x1b   : > { %s181_s18 = sshll.u32 %s171_s16, 4  ;;  %s179_s20 = sshll.u32 %s177_s15, 4  ;;  %s182_s18 = int_to_ptr.vmem [resolvable:$true] %s181_s18  ;;  %s180_s20 = int_to_ptr.hbm [resolvable:$true] %s179_s20 }
  0x1c   : > { %s168_s28 = scalar_lea.sflag [#allocation7], %s146_s25  ;;  %190 = sbr.rel (%p187_p3) target bundleno = 71 (0x47), region = 28 }
  0x1d   : > { %440 = dma.hbm_to_vmem [thread:$0]  (!%p435_p0), %s180_s20, 32, %s182_s18, %s168_s28  }
  0x1e   : > { %s737_s19 = sand.u32 (!%p187_p3), 1, %s627_s10  }
  0x1f   : > { %s421_s29 = sshll.u32 (!%p187_p3), %s737_s19, 1  ;;  %s193_s30 = scalar_lea.sflag (!%p187_p3), [#allocation4], %s737_s19 }
  0x20   : > { %s196_s3 = scalar_lea.vmem (!%p187_p3), [#allocation3], %s421_s29 }
  0x21   : > { %610 = dma.done.wait (%p707_p8), %s193_s30, 32  }
  0x22   : > { %612 = vsyncadd (%p707_p8), %s193_s30, 4294967264  ;;  %s203_s26 = scalar_lea.sflag [#allocation7], %s737_s19  ;;  %s206_s25 = scalar_lea.vmem [#allocation6], %s421_s29 }
  0x23   : > { %614 = dma.done.wait (%p707_p8), %s203_s26, 32  }
  0x24   : > { %616 = vsyncadd (%p707_p8), %s203_s26, 4294967264  ;;  %v236_v0 = vld [vmem:[%s196_s3] sm:$0x3]  ;;  %vm242_vm0 = vcmask 1041408   ;;  %v235_v2 = vld [vmem:[%s206_s25] sm:$0x3] }
  0x25   : > { %v237_v1 = vmul.f32 0.5, %v236_v0  ;;  %v257_v3 = vsel %vm242_vm0, %v235_v2, 0.0  ;;  %s423_s21 = sshll.u32 %s737_s19, 3  ;;  %s425_s27 = sshll.u32 %s635_s12, 3  ;;  %vm264_vm1 = vcmask 1040384   ;;  %vm267_vm2 = vcmask 1042432  }
  0x26   : > { %v258_v4 = vrot.slane %v257_v3, 4  ;;  %s298_s6 = scalar_lea.hbm %s795_s2, %s425_s27  ;;  %s232_s7 = scalar_lea.vmem [#allocation8], %s423_s21 }
  0x27   : > { %495 = vtanh.f32 %v237_v1  ;;  %s300_s8 = sshll.u32 %s232_s7, 4  ;;  %s302_s15 = sshll.u32 %s298_s6, 4  ;;  %s301_s8 = int_to_ptr.vmem [resolvable:$true] %s300_s8  ;;  %s303_s15 = int_to_ptr.hbm [resolvable:$true] %s302_s15 }
  0x28   : > { %v259_v7 = vadd.f32 %v258_v4, %v257_v3  ;;  %s287_s12 = scalar_lea.sflag [#allocation5], %s737_s19  ;;  %s571_s16 = sshra.s32 %s303_s15, 4  ;;  %s572_s16 = int_to_ptr.hbm [resolvable:$true] %s571_s16 }
  0x29   : > { %s573_s18 = scalar_lea.hbm %s572_s16, 8  ;;  %s577_s29 = scalar_lea.hbm %s795_s2, 16 }
  0x2a   : > { %v260_v11 = vrot.slane %v259_v7, 2  ;;  %p574_p4 = scmp.ne.s32.totalorder %s572_s16, %s573_s18  ;;  %p578_p7 = scmp.lt.s32.totalorder %s572_s16, %s795_s2 }
  0x2b   : > { %p579_p8 = scmp.lt.s32.totalorder %s577_s29, %s573_s18 }
  0x2c   : > { %v261_v16 = vadd.f32 %v260_v11, %v259_v7  ;;  %p575_p5 = pnand %p574_p4, %p711_p9 }
  0x2d   : > { %v496_v5 = vpop.eup %495  ;;  %p580_p10 = por %p579_p8, %p578_p7 }
  0x2e   : > { %v239_v6 = vmul.f32 0.5, %v496_v5  ;;  %v262_v21 = vrot.slane %v261_v16, 1  ;;  %p576_p6 = pneg %p575_p5 }
  0x30   : > { %v240_v8 = vadd.f32 0.5, %v239_v6  ;;  %v263_v26 = vadd.f32 %v262_v21, %v261_v16  ;;  %p581_p13 = pnand %p580_p10, %p576_p6 }
  0x32   : > { %v241_v9 = vmul.f32 %v240_v8, %v235_v2  ;;  %v250_v10 = vsel %vm242_vm0, %v240_v8, 0.0 }
  0x33   : > { %v251_v12 = vrot.slane %v250_v10, 4 }
  0x34   : > { %v243_v13 = vsel %vm242_vm0, %v241_v9, 0.0 }
  0x35   : > { %v244_v14 = vrot.slane %v243_v13, 4  ;;  %v252_v15 = vadd.f32 %v251_v12, %v250_v10 }
  0x37   : > { %v245_v17 = vadd.f32 %v244_v14, %v243_v13  ;;  %v253_v18 = vrot.slane %v252_v15, 2 }
  0x39   : > { %v246_v19 = vrot.slane %v245_v17, 2  ;;  %v254_v20 = vadd.f32 %v253_v18, %v252_v15 }
  0x3b   : > { %v247_v22 = vadd.f32 %v246_v19, %v245_v17  ;;  %v255_v23 = vrot.slane %v254_v20, 1 }
  0x3d   : > { %v248_v24 = vrot.slane %v247_v22, 1  ;;  %v256_v25 = vadd.f32 %v255_v23, %v254_v20 }
  0x3f   : > { %v249_v27 = vadd.f32 %v248_v24, %v247_v22 }
  0x41   : > { %v265_v28 = vsel %vm264_vm1, %v249_v27, %v256_v25 }
  0x42   : > { %v266_v29 = vsel %vm242_vm0, %v265_v28, %v263_v26 }
  0x43   : > { %v268_v30 = vsel %vm267_vm2, %v266_v29, 0.0 }
  0x44   : > { %285 = vst [vmem:[%s232_s7] sm:$0xff] %v268_v30 }
  0x45   : > { %584 = shalt.err (!%p581_p13)
}
  0x46   : > { %432 = dma.vmem_to_hbm [thread:$0]  (%p711_p9), %s301_s8, 128, %s303_s15, %s287_s12  }
  0x47 PF: > { %s314_s19 = sand.u32 1, %s623_s9   ;;  %p442_p0 = pnand %p415_p12, %p718_p11 }
  0x48   : > { %s315_s26 = scalar_lea.sflag [#allocation5], %s314_s19 }
  0x49   : > { %p443_p1 = pneg %p442_p0 }
  0x4b   : > { %618 = dma.done.wait (%p443_p1), %s315_s26, 128  }
  0x4c   : > { %620 = vsyncadd (%p443_p1), %s315_s26, 4294967168  ;;  %s21_s14 = sadd.s32 1, %s643_s14   ;;  %s800_s9 = smov %s627_s10 }
  0x4d   : > { %p18_p2 = scmp.ge.s32.totalorder %s21_s14, 4   ;;  %s801_s10 = smov %s631_s11 }
  0x4e   : > { %s802_s11 = smov %s716_s23  ;;  %s803_s12 = smov %s639_s13 }
  0x4f   : > { %s804_s13 = smov %s806_s17  ;;  %20 = sbr.rel (!%p18_p2) target bundleno = 8 (0x8), region = 98 }
  0x54   :  { %321 = vsyncpa [#allocation4], 1 }
  0x55   :  { %323 = vsyncpa [#allocation4 + $0x1], 1 }
  0x56   :  { %324 = vsyncpa [#allocation7], 1 }
  0x57   :  { %326 = vsyncpa [#allocation7 + $0x1], 1 }
  0x58   :  { %327 = vsyncpa [#allocation5], 1 }
  0x59   :  { %329 = vsyncpa [#allocation5 + $0x1], 1 }

</bundles_post_ra>
